<compile_context>
chip_gen: v5e
topology: v5e:2x2
jax: 0.10.0
libtpu: 0.0.40
codegen_flags: <defaults>
</compile_context>

<pallas_src>
import math
import jax
import jax.numpy as jnp
from jax import lax
from jax.experimental import pallas as pl
from jax.experimental.pallas import tpu as pltpu


_VMEM_TILE_BUDGET = 40 * 1024 * 1024  # conservative: fits v7x per-TC VMEM with headroom


def bert_intermediate_kernel(x_ref, w_ref, b_ref, o_ref):
    # x_ref: (tm, H) bf16   w_ref: (H, tn) bf16   b_ref: (1, tn) f32   o_ref: (tm, tn)
    # MXU-native contraction: (tm,H) x (H,tn) -> (tm,tn), f32 accumulate.
    y = jnp.dot(x_ref[...], w_ref[...], preferred_element_type=jnp.float32)
    y = y + b_ref[...]
    # Exact gelu (erf variant). lax.erf lowers to a VPU polynomial; the kernel
    # is MXU-bound at these tile sizes so it hides under the matmul. If the VPU
    # ever becomes the binding slot, switch to the tanh approximation (EUP).
    y = y * 0.5 * (1.0 + lax.erf(y * jnp.float32(1.0 / math.sqrt(2.0))))
    o_ref[...] = y.astype(o_ref.dtype)


def _round_up(x, m):
    return ((x + m - 1) // m) * m


def _step_vmem_bytes(tm, tn, H, in_sz, out_sz):
    # Pallas double-buffers every BlockSpec'd operand by default.
    return 2 * (tm * H * in_sz + H * tn * in_sz + tn * 4 + tm * tn * out_sz)


def _select_tiles(M, H, I, in_sz, out_sz, tm_req, budget):
    """Pick (tm, tn). Prefer tn == I (weight VMEM-resident, DMAed once)."""
    tm_cap = _round_up(M, 16)                       # 16-row alignment (bf16 packing)
    tm = min(_round_up(tm_req, 16), tm_cap)

    # Preferred path: full intermediate dim resident; shrink rows if needed.
    t = tm
    while True:
        if _step_vmem_bytes(t, I, H, in_sz, out_sz) <= budget:
            return t, I
        if t <= 128:
            break
        t = max(128, ((t // 2) // 16) * 16)

    # Fallback (very large I*H): tile the intermediate dim with MXU-friendly
    # multiples of 256 (then 128); the weight tile becomes the OUTER grid axis
    # so it is still streamed only once in total.
    for align in (256, 128):
        if I % align != 0:
            continue
        best = 0
        cand = align
        while cand <= I:
            if I % cand == 0 and _step_vmem_bytes(tm, cand, H, in_sz, out_sz) <= budget:
                best = cand
            cand += align
        if best:
            return tm, best
    if I % 128 == 0:
        return tm, 128
    return tm, I   # tiny, non-lane-aligned I: take the whole thing


def prepare_bert_intermediate_params(weight, bias, compute_dtype=jnp.bfloat16):
    """One-time parameter prep (do at load time, NOT per call).

    PyTorch Linear weight [I, H] -> MXU-native [H, I] in compute dtype,
    bias [I] -> [1, I] f32 (epilogue stays in f32).
    """
    w_hi = jnp.asarray(weight).T.astype(compute_dtype)          # [H, I]
    b2d = jnp.asarray(bias).reshape(1, -1).astype(jnp.float32)  # [1, I]
    return w_hi, b2d


def bert_intermediate(hidden_states, w_hi, b2d, *, tm=512, out_dtype=None,
                      compute_dtype=jnp.bfloat16):
    """hidden_states: [B, S, H]; w_hi: [H, I] (prepared); b2d: [1, I] f32."""
    B, S, H = hidden_states.shape
    Hw, I = w_hi.shape
    assert Hw == H, (Hw, H)
    M = B * S
    out_dtype = hidden_states.dtype if out_dtype is None else out_dtype

    in_sz = jnp.dtype(compute_dtype).itemsize
    out_sz = jnp.dtype(out_dtype).itemsize
    tm_eff, tn_eff = _select_tiles(M, H, I, in_sz, out_sz, tm, _VMEM_TILE_BUDGET)
    M_pad = _round_up(M, tm_eff)

    x2d = hidden_states.reshape(M, H).astype(compute_dtype)
    if M_pad != M:
        # Padded rows compute gelu(bias) and are sliced off below (pad stays zero).
        x2d = jnp.pad(x2d, ((0, M_pad - M), (0, 0)))
    w = w_hi if w_hi.dtype == compute_dtype else w_hi.astype(compute_dtype)
    b = b2d if b2d.dtype == jnp.float32 else b2d.astype(jnp.float32)

    n_row = M_pad // tm_eff
    n_col = I // tn_eff
    # Weight (column) axis is OUTER: the weight block index never changes along
    # the inner row axis, so it is fetched exactly once per column tile
    # (= exactly once overall); activations are the (cheaper) re-streamed side.
    grid = (n_col, n_row)

    needed_vmem = _step_vmem_bytes(tm_eff, tn_eff, H, in_sz, out_sz)
    cost = pl.CostEstimate(
        flops=2 * M_pad * I * H,
        transcendentals=M_pad * I,
        bytes_accessed=int(I * H * in_sz                 # weight, streamed once
                           + n_col * M_pad * H * in_sz   # x, once per column tile
                           + I * 4                        # bias
                           + M_pad * I * out_sz),         # output write
    )

    cp_kwargs = dict(dimension_semantics=("parallel", "parallel"))
    if needed_vmem > 16 * 1024 * 1024:   # above the smallest default scoped limit
        cp_kwargs["vmem_limit_bytes"] = int(needed_vmem + 4 * 1024 * 1024)

    out2d = pl.pallas_call(
        bert_intermediate_kernel,
        out_shape=jax.ShapeDtypeStruct((M_pad, I), out_dtype),
        grid_spec=pltpu.PrefetchScalarGridSpec(
            num_scalar_prefetch=0,
            grid=grid,
            in_specs=[
                pl.BlockSpec((tm_eff, H), lambda j, i: (i, 0)),   # activations
                pl.BlockSpec((H, tn_eff), lambda j, i: (0, j)),   # weight (resident if n_col==1)
                pl.BlockSpec((1, tn_eff), lambda j, i: (0, j)),   # bias slice
            ],
            out_specs=pl.BlockSpec((tm_eff, tn_eff), lambda j, i: (i, j)),
        ),
        compiler_params=pltpu.CompilerParams(**cp_kwargs),
        cost_estimate=cost,
    )(x2d, w, b)

    out2d = out2d[:M] if M_pad != M else out2d
    return out2d.reshape(B, S, I)


def _reference(hidden_states, weight, bias, compute_dtype=jnp.bfloat16):
    # Matches the kernel's bf16 operand cast + f32 accumulation + f32 gelu.
    x = hidden_states.astype(compute_dtype).astype(jnp.float32)
    w = weight.astype(compute_dtype).astype(jnp.float32)
    y = jnp.einsum("bsh,ih->bsi", x, w,
                   precision=lax.Precision.HIGHEST) + bias.astype(jnp.float32)
    g = y * 0.5 * (1.0 + lax.erf(y / jnp.sqrt(2.0)))
    return g.astype(hidden_states.dtype)


if __name__ == "__main__":
    # Small BERT-like shapes: batch=2, seq=8, hidden=32, intermediate=128
    B, S, H, I = 2, 8, 32, 128
    key = jax.random.PRNGKey(0)
    kx, kw, kb = jax.random.split(key, 3)

    x = jax.random.normal(kx, (B, S, H), dtype=jnp.float32)
    weight = jax.random.normal(kw, (I, H), dtype=jnp.float32) * 0.02  # torch Linear [I, H]
    bias = jax.random.normal(kb, (I,), dtype=jnp.float32) * 0.02

    # One-time parameter prep (hoisted out of the hot path).
    w_hi, b2d = prepare_bert_intermediate_params(weight, bias)

    out = bert_intermediate(x, w_hi, b2d)
    out = jax.block_until_ready(out)

    ref = _reference(x, weight, bias)
    assert out.shape == (B, S, I)
    err = float(jnp.max(jnp.abs(out.astype(jnp.float32) - ref.astype(jnp.float32))))
    assert err < 1e-4, err
    print("KERNEL_OK")
</pallas_src>

<mosaic_0001>
module attributes {stable_mosaic.version = 11 : i64} {
  func.func @bert_intermediate_kernel(%arg0: i32, %arg1: i32, %arg2: memref<16x32xbf16, #tpu.memory_space<vmem>>, %arg3: memref<32x128xbf16, #tpu.memory_space<vmem>>, %arg4: memref<1x128xf32, #tpu.memory_space<vmem>>, %arg5: memref<16x128xf32, #tpu.memory_space<vmem>>) attributes {dimension_semantics = [#tpu.dimension_semantics<parallel>, #tpu.dimension_semantics<parallel>], iteration_bounds = array<i64: 1, 1>, scalar_prefetch = 0 : i64, scratch_operands = 0 : i64, tpu.core_type = #tpu.core_type<tc>, window_params = [{transform_indices = @transform_0, window_bounds = array<i64: 16, 32>}, {transform_indices = @transform_1, window_bounds = array<i64: 32, 128>}, {transform_indices = @transform_2, window_bounds = array<i64: 1, 128>}, {transform_indices = @transform_3, window_bounds = array<i64: 16, 128>}]} {
    %c0 = arith.constant 0 : index
    %c0_0 = arith.constant 0 : index
    %0 = vector.load %arg2[%c0, %c0_0] : memref<16x32xbf16, #tpu.memory_space<vmem>>, vector<16x32xbf16>
    %c0_1 = arith.constant 0 : index
    %c0_2 = arith.constant 0 : index
    %1 = vector.load %arg3[%c0_1, %c0_2] : memref<32x128xbf16, #tpu.memory_space<vmem>>, vector<32x128xbf16>
    %cst = arith.constant dense<0.000000e+00> : vector<16x128xf32>
    %2 = tpu.matmul %0, %1, %cst {dimension_numbers = #tpu.dot_dimension_numbers<[1], [0], [0], [1], [0, 0, 1, 1], [], []>} : vector<16x32xbf16>, vector<32x128xbf16>, vector<16x128xf32> -> vector<16x128xf32>
    %c0_3 = arith.constant 0 : index
    %c0_4 = arith.constant 0 : index
    %3 = vector.load %arg4[%c0_3, %c0_4] : memref<1x128xf32, #tpu.memory_space<vmem>>, vector<1x128xf32>
    %4 = vector.broadcast %3 : vector<1x128xf32> to vector<16x128xf32>
    %5 = arith.addf %2, %4 : vector<16x128xf32>
    %cst_5 = arith.constant 5.000000e-01 : f32
    %6 = vector.broadcast %cst_5 : f32 to vector<16x128xf32>
    %7 = arith.mulf %5, %6 : vector<16x128xf32>
    %cst_6 = arith.constant 0.707106769 : f32
    %8 = vector.broadcast %cst_6 : f32 to vector<16x128xf32>
    %9 = arith.mulf %5, %8 : vector<16x128xf32>
    %10 = math.erf %9 : vector<16x128xf32>
    %cst_7 = arith.constant 1.000000e+00 : f32
    %11 = vector.broadcast %cst_7 : f32 to vector<16x128xf32>
    %12 = arith.addf %11, %10 : vector<16x128xf32>
    %13 = arith.mulf %7, %12 : vector<16x128xf32>
    %c0_8 = arith.constant 0 : index
    %c0_9 = arith.constant 0 : index
    %14 = vector.load %arg5[%c0_8, %c0_9] : memref<16x128xf32, #tpu.memory_space<vmem>>, vector<16x128xf32>
    tpu.vector_store %arg5[%c0_8, %c0_9], %13 {strides = array<i32>} : memref<16x128xf32, #tpu.memory_space<vmem>>, vector<16x128xf32>,
    return
  }
  func.func @transform_0(%arg0: i32, %arg1: i32) -> (i32, i32) {
    %c0_i32 = arith.constant 0 : i32
    %c0_i32_0 = arith.constant 0 : i32
    return %arg1, %c0_i32 : i32, i32
  }
  func.func @transform_1(%arg0: i32, %arg1: i32) -> (i32, i32) {
    %c0_i32 = arith.constant 0 : i32
    %c0_i32_0 = arith.constant 0 : i32
    return %c0_i32, %arg0 : i32, i32
  }
  func.func @transform_2(%arg0: i32, %arg1: i32) -> (i32, i32) {
    %c0_i32 = arith.constant 0 : i32
    %c0_i32_0 = arith.constant 0 : i32
    return %c0_i32, %arg0 : i32, i32
  }
  func.func @transform_3(%arg0: i32, %arg1: i32) -> (i32, i32) {
    %c0_i32 = arith.constant 0 : i32
    return %arg1, %arg0 : i32, i32
  }
}

</mosaic_0001>

<bundles_post_ra>
// kernel: tpu_custom_call.1
= control target key start
LH: loop header
LB: loop body
LE: loop exit
PB: predicated region body
PF: predicated region fallthrough
CT: control target
= control target key end

     0   :  { %8 = vsyncpa [#allocation3], 0  ;;  %s363_s0 = inlined_call_operand.hbm [shape: bf16[16,32], index: 0, kind: input, shape index: {}]   ;;  %s364_s1 = inlined_call_operand.hbm [shape: bf16[32,128], index: 1, kind: input, shape index: {}]   ;;  %s365_s2 = inlined_call_operand.vmem [shape: f32[1,128], index: 2, kind: input, shape index: {}]   ;;  %s366_s3 = inlined_call_operand.hbm [shape: f32[16,128], index: 3, kind: output, shape index: {}]  }
   0x1   :  { %9 = vsyncpa [#allocation6], 0 }
   0x2   :  { %10 = vsyncpa [#allocation4], 0  ;;  %s15_s14 = sshll.u32 %s363_s0, 4  ;;  %s311_s15 = smov [#allocation2]   ;;  %s16_s14 = int_to_ptr.hbm [resolvable:$true] %s15_s14 }
   0x3   :  { %s17_s16 = sshll.u32 %s311_s15, 4  ;;  %s28_s19 = sshll.u32 %s364_s1, 4  ;;  %s18_s16 = int_to_ptr.vmem [resolvable:$true] %s17_s16  ;;  %s29_s19 = int_to_ptr.hbm [resolvable:$true] %s28_s19 }
   0x4   :  { %s312_s20 = smov 64   ;;  %s313_s21 = smov 4  }
   0x5   :  { %23 = dma.hbm_to_vmem [thread:$0]  %s16_s14, 128, %s18_s16, [#allocation3], %s312_s20, %s312_s20, %s313_s21  }
   0x6   :  { %s314_s22 = smov [#allocation5]  }
   0x7   :  { %s30_s23 = sshll.u32 %s314_s22, 4  ;;  %s31_s23 = int_to_ptr.vmem [resolvable:$true] %s30_s23 }
   0x8   :  { %36 = dma.hbm_to_vmem [thread:$0]  %s29_s19, 256, %s31_s23, [#allocation6], %s312_s20, %s312_s20, %s313_s21  }
   0x9   :  { %305 = dma.done.wait [#allocation3], 128  }
   0xa   :  { %306 = vsyncadd [#allocation3], 4294967168 }
   0xb   :  { %307 = dma.done.wait [#allocation6], 256  }
   0xc   :  { %308 = vsyncadd [#allocation6], 4294967040  ;;  %v220_v0 = vld [vmem:[#allocation5 + $0x8] sm:$0xff]  ;;  %v219_v1 = vld [vmem:[#allocation5] sm:$0xff]  ;;  %vm75_vm0 = vcmask 261120   ;;  %s189_s27 = sshll.u32 %s366_s3, 4  ;;  %s190_s27 = int_to_ptr.hbm [resolvable:$true] %s189_s27 }
   0xd   :  { %85 = vmatpush.bf16.msra.mxu0 %v220_v0  ;;  %v218_v2 = vld [vmem:[#allocation2] sm:$0xff]  ;;  %s316_s28 = smov 128   ;;  %s317_s29 = smov 8  }
   0xe   :  { %v228_v3 = vld [vmem:[%s365_s2] ss:$0 sm:$0xff]  ;;  %s315_s2 = smov [#allocation7]  }
   0xf   :  { %s187_s24 = sshll.u32 %s315_s2, 4  ;;  %s188_s24 = int_to_ptr.vmem [resolvable:$true] %s187_s24 }
  0x11   :  { %86 = vmatpush.bf16.msra.mxu0 %v219_v1 }
  0x14   :  { %215 = vmatmul.msk.bf16.vlgmr.msra.gmra.mxu0 %vm75_vm0, %v218_v2 }
  0x91   :  { %v88_v4 = vpop.f32.mrf.mxu0 }
  0x92   :  { %v347_v5 = vadd.f32 %v228_v3, %v88_v4 }
  0x94   :  { %v95_v6 = vmul.f32 0.70710677, %v347_v5 }
  0x96   :  { %v97_v7 = vmul.f32 %v95_v6, %v95_v6 }
  0x98   :  { %v98_v8 = vmin.f32 %v97_v7, 16.0 }
  0x99   :  { %v90_v9 = vpop.f32.mrf.mxu0 }
  0x9a   :  { %v99_v10 = vmul.f32 2.1237322e-06, %v98_v8  ;;  %v110_v11 = vmul.f32 3.8918573e-05, %v98_v8  ;;  %v350_v12 = vadd.f32 %v228_v3, %v90_v9 }
  0x9c   :  { %v100_v13 = vadd.f32 0.00028619796, %v99_v10  ;;  %v111_v14 = vadd.f32 0.001143296, %v110_v11  ;;  %v353_v15 = vmul.f32 0.70710677, %v350_v12 }
  0x9d   :  { %v93_v11 = vmul.f32 0.5, %v347_v5  ;;  %v94_v5 = vmul.f32 0.5, %v350_v12 }
  0x9e   :  { %v101_v16 = vmul.f32 %v100_v13, %v98_v8  ;;  %v112_v17 = vmul.f32 %v111_v14, %v98_v8  ;;  %v137_v18 = vmul.f32 %v353_v15, %v353_v15 }
  0xa0   :  { %v113_v19 = vadd.f32 0.014752088, %v112_v17  ;;  %v102_v20 = vadd.f32 0.0036580483, %v101_v16  ;;  %v138_v21 = vmin.f32 %v137_v18, 16.0 }
  0xa2   :  { %v114_v22 = vmul.f32 %v113_v19, %v98_v8  ;;  %v139_v23 = vmul.f32 2.1237322e-06, %v138_v21  ;;  %v150_v24 = vmul.f32 3.8918573e-05, %v138_v21  ;;  %v103_v26 = vmul.f32 %v102_v20, %v98_v8 }
  0xa4   :  { %v115_v25 = vadd.f32 0.112945676, %v114_v22  ;;  %v140_v27 = vadd.f32 0.00028619796, %v139_v23  ;;  %v151_v28 = vadd.f32 0.001143296, %v150_v24 }
  0xa5   :  { %v104_v33 = vadd.f32 0.05243302, %v103_v26 }
  0xa6   :  { %v116_v29 = vmul.f32 %v115_v25, %v98_v8  ;;  %v141_v30 = vmul.f32 %v140_v27, %v138_v21  ;;  %v152_v31 = vmul.f32 %v151_v28, %v138_v21 }
  0xa7   :  { %v105_v39 = vmul.f32 %v104_v33, %v98_v8 }
  0xa8   :  { %v117_v32 = vadd.f32 0.4994258, %v116_v29  ;;  %v153_v34 = vadd.f32 0.014752088, %v152_v31  ;;  %v142_v36 = vadd.f32 0.0036580483, %v141_v30 }
  0xa9   :  { %v106_v43 = vadd.f32 0.18741608, %v105_v39 }
  0xaa   :  { %v118_v35 = vmul.f32 %v117_v32, %v98_v8  ;;  %v154_v37 = vmul.f32 %v153_v34, %v138_v21  ;;  %v143_v41 = vmul.f32 %v142_v36, %v138_v21 }
  0xab   :  { %v107_v48 = vmul.f32 %v106_v43, %v98_v8 }
  0xac   :  { %v119_v38 = vadd.f32 1.0, %v118_v35  ;;  %v155_v40 = vadd.f32 0.112945676, %v154_v37  ;;  %v144_v45 = vadd.f32 0.05243302, %v143_v41 }
  0xad   :  { %v108_v54 = vadd.f32 1.1283791, %v107_v48 }
  0xae   :  { %229 = vrcp.f32 %v119_v38  ;;  %v156_v42 = vmul.f32 %v155_v40, %v138_v21  ;;  %v145_v51 = vmul.f32 %v144_v45, %v138_v21  ;;  %v131_v53 = vand.u32 2147483648, %v119_v38 }
  0xaf   :  { %v129_v56 = vand.u32 2147483647, %v119_v38  ;;  %vm125_vm2 = vweird.f32 %v119_v38  ;;  %v109_v61 = vmul.f32 %v108_v54, %v95_v6 }
  0xb0   :  { %v157_v44 = vadd.f32 0.4994258, %v156_v42  ;;  %v146_v57 = vadd.f32 0.18741608, %v145_v51  ;;  %v132_v59 = vor.u32 1.1754944e-38, %v131_v53 }
  0xb1   :  { %vm130_vm4 = vcmp.eq.f32.partialorder %v129_v56, 8.507059e+37 }
  0xb2   :  { %v158_v46 = vmul.f32 %v157_v44, %v138_v21  ;;  %v147_v0 = vmul.f32 %v146_v57, %v138_v21 }
  0xb4   :  { %v230_v47 = vpop.eup %229  ;;  %v159_v50 = vadd.f32 1.0, %v158_v46  ;;  %v148_v8 = vadd.f32 1.1283791, %v147_v0 }
  0xb5   :  { %v121_v49 = vmul.f32 %v230_v47, %v119_v38  ;;  %vm126_vm1 = vweird.f32 %v230_v47 }
  0xb6   :  { %231 = vrcp.f32 %v159_v50  ;;  %vm127_vm3 = vmor %vm125_vm2, %vm126_vm1  ;;  %v171_v7 = vand.u32 2147483648, %v159_v50  ;;  %v169_v10 = vand.u32 2147483647, %v159_v50  ;;  %vm165_vm6 = vweird.f32 %v159_v50 }
  0xb7   :  { %v122_v52 = vsub.f32 1.0, %v121_v49  ;;  %v149_v17 = vmul.f32 %v148_v8, %v353_v15 }
  0xb8   :  { %v172_v6 = vor.u32 1.1754944e-38, %v171_v7  ;;  %vm170_vm8 = vcmp.eq.f32.partialorder %v169_v10, 8.507059e+37 }
  0xb9   :  { %v123_v55 = vmul.f32 %v230_v47, %v122_v52 }
  0xbb   :  { %v124_v58 = vadd.f32 %v230_v47, %v123_v55 }
  0xbc   :  { %v232_v60 = vpop.eup %231 }
  0xbd   :  { %v128_v62 = vsel %vm127_vm3, %v230_v47, %v124_v58  ;;  %v161_v1 = vmul.f32 %v232_v60, %v159_v50  ;;  %vm166_vm5 = vweird.f32 %v232_v60 }
  0xbe   :  { %v133_v63 = vsel %vm130_vm4, %v132_v59, %v128_v62  ;;  %vm167_vm7 = vmor %vm165_vm6, %vm166_vm5 }
  0xbf   :  { %v134_v2 = vmul.f32 %v133_v63, %v109_v61  ;;  %v162_v3 = vsub.f32 1.0, %v161_v1 }
  0xc1   :  { %v216_v4 = vclamps-f32 %v134_v2, 1.0  ;;  %v163_v9 = vmul.f32 %v232_v60, %v162_v3 }
  0xc3   :  { %v177_v13 = vadd.f32 1.0, %v216_v4  ;;  %v164_v14 = vadd.f32 %v232_v60, %v163_v9 }
  0xc5   :  { %v179_v16 = vmul.f32 %v177_v13, %v93_v11  ;;  %v168_v18 = vsel %vm167_vm7, %v232_v60, %v164_v14 }
  0xc6   :  { %v173_v19 = vsel %vm170_vm8, %v172_v6, %v168_v18 }
  0xc7   :  { %181 = vst [vmem:[#allocation7] sm:$0xff] %v179_v16  ;;  %v174_v20 = vmul.f32 %v173_v19, %v149_v17 }
  0xc9   :  { %v217_v21 = vclamps-f32 %v174_v20, 1.0 }
  0xcb   :  { %v178_v22 = vadd.f32 1.0, %v217_v21 }
  0xcd   :  { %v180_v23 = vmul.f32 %v178_v22, %v94_v5 }
  0xcf   :  { %182 = vst [vmem:[#allocation7 + $0x8] sm:$0xff] %v180_v23 }
  0xd0   :  { %195 = dma.vmem_to_hbm [thread:$0]  %s188_s24, 256, %s190_s27, [#allocation4], %s316_s28, %s316_s28, %s317_s29  }
  0xd1   :  { %309 = dma.done.wait [#allocation4], 256  }
  0xd2   :  { %310 = vsyncadd [#allocation4], 4294967040 }
  0xd3   :  { %200 = vsyncpa [#allocation3], 1 }
  0xd4   :  { %201 = vsyncpa [#allocation6], 1 }
  0xd5   :  { %202 = vsyncpa [#allocation4], 1 }

</bundles_post_ra>
